<compile_context>
chip_gen: v7x
topology: tpu7x:2x2x1
jax: 0.10.0
libtpu: 0.0.40
codegen_flags: <defaults>
</compile_context>

<pallas_src>
import functools
import math

import jax
import jax.numpy as jnp
from jax.experimental import pallas as pl
from jax.experimental.pallas import tpu as pltpu


_FUSED_BYTES_LIMIT = 2 * 1024 * 1024     # use the single fused kernel below this
_TARGET_TILE_BYTES = 4 * 1024 * 1024     # per-block x bytes in the tiled path
_VMEM_LIMIT_BYTES = 32 * 1024 * 1024     # safe on v5e/v6e (128 MiB) and v7x (64 MiB)


def _sublane_multiple(dtype):
    nbytes = jnp.dtype(dtype).itemsize
    if nbytes >= 4:
        return 8
    if nbytes == 2:
        return 16
    return 32


# ---------------- fused single-block path (small inputs) ----------------
def _make_fused_kernel(eps):
    def kernel(x_ref, o_ref):
        xb = x_ref[...].astype(jnp.float32)
        mean = jnp.mean(xb, axis=0, keepdims=True)
        centered = xb - mean
        var = jnp.mean(centered * centered, axis=0, keepdims=True)  # exact two-pass
        rstd = jax.lax.rsqrt(var + jnp.float32(eps))
        o_ref[...] = (centered * rstd).astype(o_ref.dtype)

    return kernel


# ---------------- tiled two-pass path (large inputs) ----------------
def _make_stats_kernel(n_rows, k, C, eps):
    """Accumulates per-packed-column sum / sum-of-squares, finalizes per-feature
    mean and rsqrt(var + eps), broadcast back to the packed (1, k*C) width."""

    def kernel(x_ref, mean_ref, rstd_ref, sum_sc, sq_sc):
        i = pl.program_id(0)

        @pl.when(i == 0)
        def _():
            sum_sc[...] = jnp.zeros_like(sum_sc)
            sq_sc[...] = jnp.zeros_like(sq_sc)

        xb = x_ref[...].astype(jnp.float32)
        sum_sc[...] += jnp.sum(xb, axis=0, keepdims=True)
        sq_sc[...] += jnp.sum(xb * xb, axis=0, keepdims=True)

        @pl.when(i == pl.num_programs(0) - 1)
        def _():
            s = sum_sc[...]
            q = sq_sc[...]
            s_c = s[:, 0:C]
            q_c = q[:, 0:C]
            for r in range(1, k):  # combine the k lane-packed row groups
                s_c = s_c + s[:, r * C:(r + 1) * C]
                q_c = q_c + q[:, r * C:(r + 1) * C]
            inv_n = jnp.float32(1.0 / n_rows)
            mean_c = s_c * inv_n
            # biased variance (torch unbiased=False); clamp guards fp cancellation
            var_c = jnp.maximum(q_c * inv_n - mean_c * mean_c, 0.0)
            rstd_c = jax.lax.rsqrt(var_c + jnp.float32(eps))
            if k > 1:
                mean_ref[...] = jnp.concatenate([mean_c] * k, axis=1)
                rstd_ref[...] = jnp.concatenate([rstd_c] * k, axis=1)
            else:
                mean_ref[...] = mean_c
                rstd_ref[...] = rstd_c

    return kernel


def _norm_kernel(x_ref, mean_ref, rstd_ref, o_ref):
    xb = x_ref[...].astype(jnp.float32)
    o_ref[...] = ((xb - mean_ref[...]) * rstd_ref[...]).astype(o_ref.dtype)


@functools.partial(jax.jit, static_argnames=("eps",))
def bn_forward(x, eps=1e-05):
    """BN forward: normalize every feature over all leading dims (affine=False)."""
    orig_shape = x.shape
    C = orig_shape[-1]
    N = math.prod(orig_shape[:-1])
    x2d = x.reshape(N, C)

    total_f32_bytes = N * C * 4
    if total_f32_bytes <= _FUSED_BYTES_LIMIT:
        # Launch-overhead dominated regime: one fused kernel, whole x in VMEM.
        y2d = pl.pallas_call(
            _make_fused_kernel(eps),
            out_shape=jax.ShapeDtypeStruct((N, C), x.dtype),
            compiler_params=pltpu.CompilerParams(
                vmem_limit_bytes=_VMEM_LIMIT_BYTES
            ),
        )(x2d)
        return y2d.reshape(orig_shape)

    # ---- lane-dense packing: fold rows into lanes when C is small ----
    if C < 128 and 128 % C == 0:
        k = 128 // C
    else:
        k = 1
    W = k * C

    mult = _sublane_multiple(x.dtype)
    Np = pl.cdiv(N, k)  # packed rows before padding
    bytes_per_packed_row = W * jnp.dtype(x.dtype).itemsize
    target_rows = max(
        mult, (_TARGET_TILE_BYTES // bytes_per_packed_row) // mult * mult
    )
    tn = min(target_rows, pl.cdiv(Np, mult) * mult)
    Np_pad = pl.cdiv(Np, tn) * tn
    N_pad = Np_pad * k

    if N_pad != N:
        # Zero rows contribute 0 to sum / sum-of-squares; stats divide by true N.
        x2d = jnp.pad(x2d, ((0, N_pad - N), (0, 0)))
    xp = x2d.reshape(Np_pad, W)
    grid = (Np_pad // tn,)

    # ---- pass 1: per-feature mean and rsqrt(var + eps) ----
    mean_p, rstd_p = pl.pallas_call(
        _make_stats_kernel(N, k, C, eps),
        out_shape=(
            jax.ShapeDtypeStruct((1, W), jnp.float32),
            jax.ShapeDtypeStruct((1, W), jnp.float32),
        ),
        grid_spec=pltpu.PrefetchScalarGridSpec(
            num_scalar_prefetch=0,
            grid=grid,
            in_specs=[pl.BlockSpec((tn, W), lambda i: (i, 0))],
            out_specs=(
                pl.BlockSpec((1, W), lambda i: (0, 0)),
                pl.BlockSpec((1, W), lambda i: (0, 0)),
            ),
            scratch_shapes=[
                pltpu.VMEM((1, W), jnp.float32),
                pltpu.VMEM((1, W), jnp.float32),
            ],
        ),
        compiler_params=pltpu.CompilerParams(
            dimension_semantics=("arbitrary",),
            vmem_limit_bytes=_VMEM_LIMIT_BYTES,
        ),
    )(xp)

    # ---- pass 2: normalize (embarrassingly parallel -> megacore on v7x) ----
    yp = pl.pallas_call(
        _norm_kernel,
        out_shape=jax.ShapeDtypeStruct((Np_pad, W), x.dtype),
        grid_spec=pltpu.PrefetchScalarGridSpec(
            num_scalar_prefetch=0,
            grid=grid,
            in_specs=[
                pl.BlockSpec((tn, W), lambda i: (i, 0)),
                pl.BlockSpec((1, W), lambda i: (0, 0)),
                pl.BlockSpec((1, W), lambda i: (0, 0)),
            ],
            out_specs=pl.BlockSpec((tn, W), lambda i: (i, 0)),
        ),
        compiler_params=pltpu.CompilerParams(
            dimension_semantics=("parallel",),
            vmem_limit_bytes=_VMEM_LIMIT_BYTES,
        ),
    )(xp, mean_p, rstd_p)

    y2d = yp.reshape(N_pad, C)[:N]
    return y2d.reshape(orig_shape)


def bn_reference(x, eps=1e-05):
    """Pure-JAX reference matching the PyTorch module semantics."""
    dims = tuple(range(x.ndim - 1))
    mean = jnp.mean(x, axis=dims, keepdims=True)
    var = jnp.var(x, axis=dims, keepdims=True)  # biased, like unbiased=False
    std = jnp.sqrt(var + eps)
    return (x - mean) / std


if __name__ == "__main__":
    key = jax.random.PRNGKey(0)
    k1, k2 = jax.random.split(key)

    # Small shape implied by the module (batch, seq_len, enc_in) -> fused path.
    B, L, C = 2, 8, 32
    x_small = jax.random.normal(k1, (B, L, C), dtype=jnp.float32) * 3.0 + 1.5
    y_small = jax.block_until_ready(bn_forward(x_small))
    y_ref_small = bn_reference(x_small)
    assert y_small.shape == x_small.shape and y_small.dtype == x_small.dtype
    assert jnp.allclose(y_small, y_ref_small, atol=1e-4, rtol=1e-4), float(
        jnp.max(jnp.abs(y_small - y_ref_small))
    )

    # Larger shape to exercise the tiled, lane-packed two-pass path.
    B2, L2, C2 = 2, 65536, 32
    x_big = jax.random.normal(k2, (B2, L2, C2), dtype=jnp.float32) * 2.0 - 0.7
    y_big = jax.block_until_ready(bn_forward(x_big))
    y_ref_big = bn_reference(x_big)
    assert y_big.shape == x_big.shape and y_big.dtype == x_big.dtype
    assert jnp.allclose(y_big, y_ref_big, atol=1e-3, rtol=1e-3), float(
        jnp.max(jnp.abs(y_big - y_ref_big))
    )

    print("KERNEL_OK")
</pallas_src>

<mosaic_0001>
module attributes {stable_mosaic.version = 11 : i64} {
  func.func @kernel(%arg0: memref<16x32xf32, #tpu.memory_space<vmem>>, %arg1: memref<16x32xf32, #tpu.memory_space<vmem>>) attributes {dimension_semantics = [], scalar_prefetch = 0 : i64, scratch_operands = 0 : i64, tpu.core_type = #tpu.core_type<tc>} {
    %c0 = arith.constant 0 : index
    %c0_0 = arith.constant 0 : index
    %0 = vector.load %arg0[%c0, %c0_0] : memref<16x32xf32, #tpu.memory_space<vmem>>, vector<16x32xf32>
    %cst = arith.constant dense<0.000000e+00> : vector<32xf32>
    %1 = vector.multi_reduction <add>, %0, %cst [0] : vector<16x32xf32> to vector<32xf32>
    %2 = vector.shape_cast %1 : vector<32xf32> to vector<1x32xf32>
    %cst_1 = arith.constant 1.600000e+01 : f32
    %3 = vector.broadcast %cst_1 : f32 to vector<1x32xf32>
    %4 = arith.divf %2, %3 : vector<1x32xf32>
    %5 = vector.broadcast %4 : vector<1x32xf32> to vector<16x32xf32>
    %6 = arith.subf %0, %5 : vector<16x32xf32>
    %7 = arith.mulf %6, %6 : vector<16x32xf32>
    %cst_2 = arith.constant dense<0.000000e+00> : vector<32xf32>
    %8 = vector.multi_reduction <add>, %7, %cst_2 [0] : vector<16x32xf32> to vector<32xf32>
    %9 = vector.shape_cast %8 : vector<32xf32> to vector<1x32xf32>
    %cst_3 = arith.constant 1.600000e+01 : f32
    %10 = vector.broadcast %cst_3 : f32 to vector<1x32xf32>
    %11 = arith.divf %9, %10 : vector<1x32xf32>
    %cst_4 = arith.constant 9.99999974E-6 : f32
    %12 = vector.broadcast %cst_4 : f32 to vector<1x32xf32>
    %13 = arith.addf %11, %12 : vector<1x32xf32>
    %14 = math.rsqrt %13 : vector<1x32xf32>
    %15 = vector.broadcast %14 : vector<1x32xf32> to vector<16x32xf32>
    %16 = arith.mulf %6, %15 : vector<16x32xf32>
    %c0_5 = arith.constant 0 : index
    %c0_6 = arith.constant 0 : index
    %17 = vector.load %arg1[%c0_5, %c0_6] : memref<16x32xf32, #tpu.memory_space<vmem>>, vector<16x32xf32>
    tpu.vector_store %arg1[%c0_5, %c0_6], %16 {strides = array<i32>} : memref<16x32xf32, #tpu.memory_space<vmem>>, vector<16x32xf32>,
    return
  }
}

</mosaic_0001>

<bundles_post_ra>
// kernel: bn_forward.1
= control target key start
LH: loop header
LB: loop body
LE: loop exit
PB: predicated region body
PF: predicated region fallthrough
CT: control target
= control target key end

     0   :  { %6 = vsyncpa [#allocation3], 0  ;;  %s178_s0 = inlined_call_operand.hbm [shape: f32[16,32], index: 0, kind: input, shape index: {}]   ;;  %s179_s1 = inlined_call_operand.hbm [shape: f32[16,32], index: 1, kind: output, shape index: {}]  }
   0x1   :  { %7 = vsyncpa [#allocation4], 0  ;;  %s128_s6 = smov [#allocation2]   ;;  %s80_s10 = scalar_lea.hbm %s178_s0, 256 }
   0x2   :  { %s13_s7 = sshll.u32 %s128_s6, 4  ;;  %p81_p0 = scmp.ne.s32.totalorder %s178_s0, %s80_s10  ;;  %s14_s7 = int_to_ptr.vmem [resolvable:$true] %s13_s7 }
   0x3   :  { %p84_p1 = scmp.lt.u32.totalorder %s80_s10, %s178_s0 }
   0x5   :  { %p86_p2 = pnand %p84_p1, %p81_p0 }
   0x7   :  { %89 = shalt.err (!%p86_p2)
}
   0x8   :  { %s90_s15 = scalar_lea.vmem %s14_s7, 256  ;;  %p95_p4 = scmp.lt.s32.totalorder %s14_s7, %s14_s7 }
   0x9   :  { %p91_p3 = scmp.ne.s32.totalorder %s14_s7, %s90_s15  ;;  %p96_p5 = scmp.lt.s32.totalorder %s90_s15, %s90_s15 }
   0xb   :  { %p97_p6 = por %p96_p5, %p95_p4 }
   0xd   :  { %p98_p7 = pnand %p97_p6, %p91_p3 }
   0xf   :  { %101 = shalt.err (!%p98_p7)
}
  0x10   :  { %s129_s16 = smov 128   ;;  %s130_s17 = smov 8  }
  0x11   :  { %19 = dma.hbm_to_vmem [thread:$0]  %s178_s0, 256, %s14_s7, [#allocation3], %s129_s16, %s129_s16, %s130_s17  }
  0x12   :  { %124 = dma.done.wait [#allocation3], 256  }
  0x13   :  { %125 = vsyncadd [#allocation3], 4294967040  ;;  %vm25_vm0 = vcmask 261120   ;;  %v23_v0 = vld [vmem:[#allocation2] sm:$0xff]  ;;  %v24_v1 = vld [vmem:[#allocation2 + $0x8] sm:$0xff]  ;;  %s131_s0 = smov [#allocation5]  }
  0x14   :  { %v26_v2 = vsel %vm25_vm0, %v23_v0, 0.0  ;;  %v27_v3 = vsel %vm25_vm0, %v24_v1, 0.0  ;;  %s62_s20 = sshll.u32 %s131_s0, 4  ;;  %s63_s20 = int_to_ptr.vmem [resolvable:$true] %s62_s20 }
  0x15   :  { %v28_v4 = vadd.f32 %v27_v3, %v26_v2  ;;  %s102_s21 = scalar_lea.vmem %s63_s20, 256  ;;  %p107_p9 = scmp.lt.s32.totalorder %s63_s20, %s63_s20 }
  0x16   :  { %p103_p8 = scmp.ne.s32.totalorder %s63_s20, %s102_s21  ;;  %p108_p10 = scmp.lt.s32.totalorder %s102_s21, %s102_s21 }
  0x17   :  { %v29_v5 = vrot.slane %v28_v4, 4 }
  0x18   :  { %p109_p11 = por %p108_p10, %p107_p9 }
  0x19   :  { %v30_v6 = vadd.f32 %v29_v5, %v28_v4 }
  0x1a   :  { %p110_p12 = pnand %p109_p11, %p103_p8 }
  0x1b   :  { %v31_v7 = vrot.slane %v30_v6, 2 }
  0x1d   :  { %v32_v8 = vadd.f32 %v31_v7, %v30_v6 }
  0x1f   :  { %v33_v9 = vrot.slane %v32_v8, 1 }
  0x21   :  { %v34_v10 = vadd.f32 %v33_v9, %v32_v8 }
  0x23   :  { %v36_v11 = vmul.f32 0.0625, %v34_v10 }
  0x25   :  { %v37_v12 = vsub.f32 %v23_v0, %v36_v11  ;;  %v38_v13 = vsub.f32 %v24_v1, %v36_v11 }
  0x27   :  { %v39_v14 = vmul.f32 %v37_v12, %v37_v12  ;;  %v40_v15 = vmul.f32 %v38_v13, %v38_v13 }
  0x29   :  { %v41_v16 = vsel %vm25_vm0, %v39_v14, 0.0  ;;  %v42_v17 = vsel %vm25_vm0, %v40_v15, 0.0 }
  0x2a   :  { %v43_v18 = vadd.f32 %v42_v17, %v41_v16 }
  0x2c   :  { %v44_v19 = vrot.slane %v43_v18, 4 }
  0x2e   :  { %v45_v20 = vadd.f32 %v44_v19, %v43_v18 }
  0x30   :  { %v46_v21 = vrot.slane %v45_v20, 2 }
  0x32   :  { %v47_v22 = vadd.f32 %v46_v21, %v45_v20 }
  0x34   :  { %v48_v23 = vrot.slane %v47_v22, 1 }
  0x36   :  { %v49_v24 = vadd.f32 %v48_v23, %v47_v22 }
  0x38   :  { %v50_v25 = vmul.f32 0.0625, %v49_v24 }
  0x3a   :  { %v51_v26 = vadd.f32 1e-05, %v50_v25 }
  0x3c   :  { %78 = vrsqrt.f32 %v51_v26 }
  0x46   :  { %v79_v27 = vpop.eup %78 }
  0x47   :  { %v53_v28 = vmul.f32 %v79_v27, %v37_v12  ;;  %v54_v29 = vmul.f32 %v79_v27, %v38_v13 }
  0x49   :  { %55 = vst.msk [vmem:[#allocation5] sm:$0xff] %vm25_vm0, %v53_v28  ;;  %56 = vst.msk [vmem:[#allocation5 + $0x8] sm:$0xff] %vm25_vm0, %v54_v29 }
  0x4a   :  { %113 = shalt.err (!%p110_p12)
}
  0x4b   :  { %s114_s24 = scalar_lea.hbm %s179_s1, 256 }
  0x4c   :  { %p115_p13 = scmp.ne.s32.totalorder %s179_s1, %s114_s24  ;;  %p118_p0 = scmp.lt.u32.totalorder %s114_s24, %s179_s1 }
  0x4e   :  { %p120_p1 = pnand %p118_p0, %p115_p13 }
  0x50   :  { %123 = shalt.err (!%p120_p1)
}
  0x51   :  { %68 = dma.vmem_to_hbm [thread:$0]  %s63_s20, 256, %s179_s1, [#allocation4], %s129_s16, %s129_s16, %s130_s17  }
  0x52   :  { %126 = dma.done.wait [#allocation4], 256  }
  0x53   :  { %127 = vsyncadd [#allocation4], 4294967040 }
  0x54   :  { %72 = vsyncpa [#allocation3], 1 }
  0x55   :  { %73 = vsyncpa [#allocation4], 1 }

</bundles_post_ra>
